<compile_context>
chip_gen: v6e
topology: v6e:2x2x1
jax: 0.10.0
libtpu: 0.0.40
codegen_flags: <defaults>
</compile_context>

<pallas_src>
import jax
import jax.numpy as jnp
from jax.experimental import pallas as pl
from jax.experimental.pallas import tpu as pltpu


# ----------------------------------------------------------------------------
# Kernels
# ----------------------------------------------------------------------------
def _gate_tail(g_pre, x_ref, wx_ref, b_ref, wpsi_ref, bpsi_ref, o_ref):
    """Shared tail: s = relu(g_pre + Wx@x + b); psi = sigmoid(Wpsi@s + bpsi); x*psi."""
    x = x_ref[...]
    s = (
        g_pre
        + jnp.dot(wx_ref[...], x.astype(wx_ref.dtype),
                  preferred_element_type=jnp.float32)
        + b_ref[...]
    )
    s = jnp.maximum(s, 0.0)
    psi_logit = (
        jnp.dot(wpsi_ref[...], s.astype(wpsi_ref.dtype),
                preferred_element_type=jnp.float32)
        + bpsi_ref[0]
    )
    psi = jax.nn.sigmoid(psi_logit)                       # (1, TPX) f32
    # Gate the skip tensor in its own dtype (bf16 multiply on bf16 inputs;
    # f32 path retained automatically for f32 callers / v5e).
    o_ref[...] = (x * psi.astype(x.dtype)).astype(o_ref.dtype)


def _gate_kernel_fused(g_ref, x_ref, wg_ref, wx_ref, b_ref, wpsi_ref,
                       bpsi_ref, o_ref):
    g_pre = jnp.dot(wg_ref[...], g_ref[...].astype(wg_ref.dtype),
                    preferred_element_type=jnp.float32)
    _gate_tail(g_pre, x_ref, wx_ref, b_ref, wpsi_ref, bpsi_ref, o_ref)


def _gate_kernel_pre(g1_ref, x_ref, wx_ref, b_ref, wpsi_ref, bpsi_ref, o_ref):
    _gate_tail(g1_ref[...].astype(jnp.float32), x_ref, wx_ref, b_ref,
               wpsi_ref, bpsi_ref, o_ref)


# ----------------------------------------------------------------------------
# VMEM capacity query (generation-aware budget; conservative fallback).
# ----------------------------------------------------------------------------
def _vmem_capacity_bytes():
    try:
        return int(pltpu.get_tpu_info().vmem_capacity_bytes)
    except Exception:
        return 64 << 20          # v7x-sized budget is safe on every generation


# ----------------------------------------------------------------------------
# Wrapper
# ----------------------------------------------------------------------------
def attention_gate_pallas(g, x, params, *, compute_dtype=None,
                          target_block_bytes=2 << 20):
    """g: (N, F_g, Hg, Wg), x: (N, F_l, H, W)  ->  (N, F_l, H, W)  (NCHW)."""
    N, F_l, H, W = x.shape
    F_g = g.shape[1]
    F_int = params["wg"].shape[0]
    out_dtype = x.dtype
    cdt = jnp.dtype(compute_dtype) if compute_dtype is not None else jnp.dtype(x.dtype)

    # Fold BatchNorm into the conv weights; merge the two shifts into one bias.
    wg_fold = params["wg"] * params["sg"][:, None]            # f32
    wx_fold = params["wx"] * params["sx"][:, None]            # f32
    wg_f = wg_fold.astype(cdt)
    wx_f = wx_fold.astype(cdt)
    bias = (params["bg"] + params["bx"]).reshape(F_int, 1).astype(jnp.float32)
    wpsi = params["wpsi"].astype(cdt)
    bpsi = params["bpsi"].reshape(1).astype(jnp.float32)      # SMEM scalar

    HW = H * W
    x3 = x.reshape(N, F_l, HW)                # pure view: no transpose, no cast

    need_resize = g.shape[-2:] != (H, W)
    if need_resize and F_int <= F_g:
        # 1x1 conv and bilinear resize commute (both channelwise-linear):
        # do W_g@g at the coarse resolution, upsample the smaller result.
        g1c = jnp.einsum("oc,nchw->nohw", wg_fold,
                         g.astype(jnp.float32)).astype(cdt)
        g1 = jax.image.resize(g1c, (N, F_int, H, W), method="linear")
        g3 = g1.reshape(N, F_int, HW)
        fused_wg = False
        Cg = F_int
    else:
        if need_resize:
            # Resize directly into the compute dtype: one materialisation,
            # not a resize pass plus a cast pass.
            g = jax.image.resize(g.astype(cdt), (N, F_g, H, W), method="linear")
        g3 = g.reshape(N, F_g, HW)
        fused_wg = True
        Cg = F_g

    g_isz = jnp.dtype(g3.dtype).itemsize
    x_isz = jnp.dtype(x3.dtype).itemsize
    o_isz = jnp.dtype(out_dtype).itemsize
    c_isz = cdt.itemsize

    # ---- pixel-tile selection (channel- and VMEM-aware) --------------------
    vmem_budget = (_vmem_capacity_bytes() * 3) // 4   # ~48 MiB v7x, ~96 MiB v5e/v6e
    # Per-pixel VMEM footprint: double-buffered g/x/out blocks + f32 s +
    # compute-dtype copy of s for the psi matmul + gated-product temp.
    per_px = (2 * (Cg * g_isz + F_l * x_isz + F_l * o_isz)
              + F_int * (4 + c_isz) + F_l * o_isz)
    weight_bytes = 2 * (F_int * (F_g + F_l + 1) * c_isz + F_int * 4 + 64)

    if HW <= 512:
        tpx = HW                                   # tiny maps: one block per image
    else:
        big_c = max(Cg * g_isz, F_l * x_isz)
        t = int(target_block_bytes) // max(big_c, 1)
        t = max(128, min((t // 128) * 128, 8192))
        if t >= HW:
            tpx = HW
        else:
            tpx = t
            d = t                                   # prefer a 128-multiple divisor
            while d >= max(128, t // 2):
                if HW % d == 0:
                    tpx = d
                    break
                d -= 128
    # Keep the whole grid-step footprint inside the VMEM budget.
    while tpx > 128 and tpx * per_px + weight_bytes > vmem_budget:
        tpx = max(128, ((tpx // 2) // 128) * 128)
    # Keep enough grid steps so v7x megacore gets work on both TensorCores.
    while N * (-(-HW // tpx)) < 4 and tpx > 512:
        tpx = max(128, ((tpx // 2) // 128) * 128)

    num_tiles = -(-HW // tpx)          # cdiv: ragged tail handled by masked writeback
    grid = (N, num_tiles)

    footprint = tpx * per_px + weight_bytes
    vmem_limit = int(min(vmem_budget, max(footprint + (4 << 20), 32 << 20)))

    def tile_spec(c):
        # (None, C, TPX): batch dim squeezed; pixel tile is lane-dense.
        return pl.BlockSpec((None, c, tpx), lambda n, j: (n, 0, j))

    def run(single_buffer_weights):
        def const_spec(shape):
            if single_buffer_weights:
                # Weight blocks never change across the grid: one buffer is enough.
                return pl.BlockSpec(shape, lambda n, j: (0,) * len(shape),
                                    pipeline_mode=pl.Buffered(1))
            return pl.BlockSpec(shape, lambda n, j: (0,) * len(shape))

        smem_spec = pl.BlockSpec(memory_space=pltpu.MemorySpace.SMEM)

        if fused_wg:
            kernel = _gate_kernel_fused
            in_specs = [tile_spec(Cg), tile_spec(F_l),
                        const_spec((F_int, F_g)), const_spec((F_int, F_l)),
                        const_spec((F_int, 1)), const_spec((1, F_int)),
                        smem_spec]
            operands = (g3, x3, wg_f, wx_f, bias, wpsi, bpsi)
        else:
            kernel = _gate_kernel_pre
            in_specs = [tile_spec(Cg), tile_spec(F_l),
                        const_spec((F_int, F_l)), const_spec((F_int, 1)),
                        const_spec((1, F_int)), smem_spec]
            operands = (g3, x3, wx_f, bias, wpsi, bpsi)

        return pl.pallas_call(
            kernel,
            out_shape=jax.ShapeDtypeStruct((N, F_l, HW), out_dtype),
            grid_spec=pltpu.PrefetchScalarGridSpec(
                num_scalar_prefetch=0,
                grid=grid,
                in_specs=in_specs,
                out_specs=tile_spec(F_l),
            ),
            compiler_params=pltpu.CompilerParams(
                dimension_semantics=("parallel", "parallel"),
                vmem_limit_bytes=vmem_limit,
            ),
        )(*operands)

    try:
        out3 = run(True)
    except Exception:
        # pipeline_mode=Buffered(1) unsupported on this JAX build: identical
        # semantics with default double-buffered weight blocks.
        out3 = run(False)

    return out3.reshape(N, F_l, H, W)


# ----------------------------------------------------------------------------
# Deterministic parameter construction (PyTorch conv layout (out,in,1,1) kept
# as (out,in); BatchNorm running stats kept separate so the reference can
# apply them un-folded).
# ----------------------------------------------------------------------------
def make_params(key, F_g, F_l, F_int, eps=1e-5):
    ks = jax.random.split(key, 11)
    wg = jax.random.normal(ks[0], (F_int, F_g), jnp.float32) * 0.1
    wx = jax.random.normal(ks[1], (F_int, F_l), jnp.float32) * 0.1
    wpsi = jax.random.normal(ks[2], (1, F_int), jnp.float32) * 0.1
    bpsi = jnp.full((1, 1), 0.05, jnp.float32)

    def bn_fold(kg, kb, km, kv):
        gamma = 1.0 + 0.1 * jax.random.normal(kg, (F_int,), jnp.float32)
        beta = 0.1 * jax.random.normal(kb, (F_int,), jnp.float32)
        mean = 0.1 * jax.random.normal(km, (F_int,), jnp.float32)
        var = jnp.abs(1.0 + 0.1 * jax.random.normal(kv, (F_int,), jnp.float32))
        scale = gamma / jnp.sqrt(var + eps)
        shift = beta - mean * scale
        return scale, shift

    sg, bg = bn_fold(ks[3], ks[4], ks[5], ks[6])
    sx, bx = bn_fold(ks[7], ks[8], ks[9], ks[10])
    return dict(wg=wg, wx=wx, sg=sg, bg=bg, sx=sx, bx=bx, wpsi=wpsi, bpsi=bpsi)


# ----------------------------------------------------------------------------
# Pure-JAX references.
# ----------------------------------------------------------------------------
def attention_gate_ref(g, x, params):
    N, F_l, H, W = x.shape
    F_g = g.shape[1]
    if g.shape[-2:] != (H, W):
        # align_corners=False (half-pixel) semantics, matching F.interpolate default.
        g = jax.image.resize(g, (N, F_g, H, W), method="linear")
    g1 = jnp.einsum("oc,nchw->nohw", params["wg"], g)
    g1 = g1 * params["sg"][None, :, None, None] + params["bg"][None, :, None, None]
    x1 = jnp.einsum("oc,nchw->nohw", params["wx"], x)
    x1 = x1 * params["sx"][None, :, None, None] + params["bx"][None, :, None, None]
    s = jnp.maximum(g1 + x1, 0.0)
    psi = jax.nn.sigmoid(jnp.einsum("oc,nchw->nohw", params["wpsi"], s)
                         + params["bpsi"][0, 0])
    return x * psi


def attention_gate_ref_quantized(g, x, params, dt):
    """Mirrors the kernel's quantisation points for the no-resize bf16 path."""
    q = lambda a: a.astype(dt).astype(jnp.float32)
    gq, xq = q(g), q(x)
    wg_f = q(params["wg"] * params["sg"][:, None])
    wx_f = q(params["wx"] * params["sx"][:, None])
    bias = (params["bg"] + params["bx"])[None, :, None, None]
    s = jnp.maximum(jnp.einsum("oc,nchw->nohw", wg_f, gq)
                    + jnp.einsum("oc,nchw->nohw", wx_f, xq) + bias, 0.0)
    psi = jax.nn.sigmoid(jnp.einsum("oc,nchw->nohw", q(params["wpsi"]), q(s))
                         + params["bpsi"][0, 0])
    return xq * q(psi)


if __name__ == "__main__":
    key = jax.random.PRNGKey(0)
    k1, k2, k3, k4, k5, k6 = jax.random.split(key, 6)

    # Case 1: coarse g with F_int > F_g -> resize-in-compute-dtype + fused W_g path.
    N, F_g, F_l, F_int, H, W = 2, 4, 4, 8, 16, 16
    g = jax.random.normal(k1, (N, F_g, H // 2, W // 2), jnp.float32)
    x = jax.random.normal(k2, (N, F_l, H, W), jnp.float32)
    params = make_params(k3, F_g, F_l, F_int)
    out = jax.block_until_ready(attention_gate_pallas(g, x, params))
    ref = attention_gate_ref(g, x, params)
    assert out.shape == (N, F_l, H, W)
    assert jnp.allclose(out, ref, atol=1e-4, rtol=1e-4), "fused-path f32 mismatch"

    # Case 2: coarse g with F_int <= F_g -> conv/resize commuted path.
    F_g2, F_l2, F_int2 = 8, 4, 4
    g2 = jax.random.normal(k4, (N, F_g2, H // 2, W // 2), jnp.float32)
    params2 = make_params(k5, F_g2, F_l2, F_int2)
    out2 = jax.block_until_ready(attention_gate_pallas(g2, x, params2))
    ref2 = attention_gate_ref(g2, x, params2)
    assert out2.shape == (N, F_l2, H, W)
    assert jnp.allclose(out2, ref2, atol=1e-4, rtol=1e-4), "commuted-path f32 mismatch"

    # Case 3: end-to-end bf16 (caller supplies bf16 tensors, so HBM traffic is
    # actually halved), g already at full resolution; compared against an
    # identically quantised reference.
    g_full = jax.random.normal(k6, (N, F_g, H, W), jnp.float32)
    g_bf, x_bf = g_full.astype(jnp.bfloat16), x.astype(jnp.bfloat16)
    out_bf = jax.block_until_ready(
        attention_gate_pallas(g_bf, x_bf, params, compute_dtype=jnp.bfloat16))
    ref_bf = attention_gate_ref_quantized(g_full, x, params, jnp.bfloat16)
    assert out_bf.dtype == jnp.bfloat16
    assert jnp.allclose(out_bf.astype(jnp.float32), ref_bf,
                        atol=2e-2, rtol=2e-2), "bf16 mismatch"

    print("KERNEL_OK")
</pallas_src>

<mosaic_0001>
module attributes {stable_mosaic.version = 11 : i64} {
  func.func @_gate_kernel_fused(%arg0: i32, %arg1: i32, %arg2: memref<1x4x256xf32, #tpu.memory_space<vmem>>, %arg3: memref<1x4x256xf32, #tpu.memory_space<vmem>>, %arg4: memref<8x4xf32, #tpu.memory_space<vmem>>, %arg5: memref<8x4xf32, #tpu.memory_space<vmem>>, %arg6: memref<8x1xf32, #tpu.memory_space<vmem>>, %arg7: memref<1x8xf32, #tpu.memory_space<vmem>>, %arg8: memref<1xf32, #tpu.memory_space<smem>>, %arg9: memref<1x4x256xf32, #tpu.memory_space<vmem>>) attributes {dimension_semantics = [#tpu.dimension_semantics<parallel>, #tpu.dimension_semantics<parallel>], iteration_bounds = array<i64: 2, 1>, scalar_prefetch = 0 : i64, scratch_operands = 0 : i64, tpu.core_type = #tpu.core_type<tc>, window_params = [{transform_indices = @transform_0, window_bounds = array<i64: 1, 4, 256>}, {transform_indices = @transform_1, window_bounds = array<i64: 1, 4, 256>}, {pipeline_mode = #tpu.pipeline_mode<synchronous>, transform_indices = @transform_2, window_bounds = array<i64: 8, 4>}, {pipeline_mode = #tpu.pipeline_mode<synchronous>, transform_indices = @transform_3, window_bounds = array<i64: 8, 4>}, {pipeline_mode = #tpu.pipeline_mode<synchronous>, transform_indices = @transform_4, window_bounds = array<i64: 8, 1>}, {pipeline_mode = #tpu.pipeline_mode<synchronous>, transform_indices = @transform_5, window_bounds = array<i64: 1, 8>}, {transform_indices = @transform_6, window_bounds = array<i64: 1>}, {transform_indices = @transform_7, window_bounds = array<i64: 1, 4, 256>}]} {
    %c0 = arith.constant 0 : index
    %c0_0 = arith.constant 0 : index
    %0 = vector.load %arg4[%c0, %c0_0] : memref<8x4xf32, #tpu.memory_space<vmem>>, vector<8x4xf32>
    %c0_1 = arith.constant 0 : index
    %c0_2 = arith.constant 0 : index
    %c0_3 = arith.constant 0 : index
    %1 = vector.load %arg2[%c0_1, %c0_2, %c0_3] : memref<1x4x256xf32, #tpu.memory_space<vmem>>, vector<1x4x256xf32>
    %2 = vector.shape_cast %1 : vector<1x4x256xf32> to vector<4x256xf32>
    %cst = arith.constant dense<0.000000e+00> : vector<8x256xf32>
    %3 = tpu.matmul %0, %2, %cst {dimension_numbers = #tpu.dot_dimension_numbers<[1], [0], [0], [1], [0, 0, 1, 1], [], []>} : vector<8x4xf32>, vector<4x256xf32>, vector<8x256xf32> -> vector<8x256xf32>
    %c0_4 = arith.constant 0 : index
    %c0_5 = arith.constant 0 : index
    %c0_6 = arith.constant 0 : index
    %4 = vector.load %arg3[%c0_4, %c0_5, %c0_6] : memref<1x4x256xf32, #tpu.memory_space<vmem>>, vector<1x4x256xf32>
    %5 = vector.shape_cast %4 : vector<1x4x256xf32> to vector<4x256xf32>
    %c0_7 = arith.constant 0 : index
    %c0_8 = arith.constant 0 : index
    %6 = vector.load %arg5[%c0_7, %c0_8] : memref<8x4xf32, #tpu.memory_space<vmem>>, vector<8x4xf32>
    %cst_9 = arith.constant dense<0.000000e+00> : vector<8x256xf32>
    %7 = tpu.matmul %6, %5, %cst_9 {dimension_numbers = #tpu.dot_dimension_numbers<[1], [0], [0], [1], [0, 0, 1, 1], [], []>} : vector<8x4xf32>, vector<4x256xf32>, vector<8x256xf32> -> vector<8x256xf32>
    %8 = arith.addf %3, %7 : vector<8x256xf32>
    %c0_10 = arith.constant 0 : index
    %c0_11 = arith.constant 0 : index
    %9 = vector.load %arg6[%c0_10, %c0_11] : memref<8x1xf32, #tpu.memory_space<vmem>>, vector<8x1xf32>
    %10 = vector.broadcast %9 : vector<8x1xf32> to vector<8x256xf32>
    %11 = arith.addf %8, %10 : vector<8x256xf32>
    %cst_12 = arith.constant 0.000000e+00 : f32
    %12 = vector.broadcast %cst_12 : f32 to vector<8x256xf32>
    %13 = arith.maximumf %11, %12 : vector<8x256xf32>
    %c0_13 = arith.constant 0 : index
    %c0_14 = arith.constant 0 : index
    %14 = vector.load %arg7[%c0_13, %c0_14] : memref<1x8xf32, #tpu.memory_space<vmem>>, vector<1x8xf32>
    %cst_15 = arith.constant dense<0.000000e+00> : vector<1x256xf32>
    %15 = tpu.matmul %14, %13, %cst_15 {dimension_numbers = #tpu.dot_dimension_numbers<[1], [0], [0], [1], [0, 0, 1, 1], [], []>} : vector<1x8xf32>, vector<8x256xf32>, vector<1x256xf32> -> vector<1x256xf32>
    %c0_16 = arith.constant 0 : index
    %16 = memref.load %arg8[%c0_16] : memref<1xf32, #tpu.memory_space<smem>>
    %17 = vector.broadcast %16 : f32 to vector<1x256xf32>
    %18 = arith.addf %15, %17 : vector<1x256xf32>
    %19 = arith.negf %18 : vector<1x256xf32>
    %20 = math.exp %19 : vector<1x256xf32>
    %cst_17 = arith.constant 1.000000e+00 : f32
    %21 = vector.broadcast %cst_17 : f32 to vector<1x256xf32>
    %22 = arith.addf %21, %20 : vector<1x256xf32>
    %23 = arith.divf %21, %22 : vector<1x256xf32>
    %24 = vector.broadcast %23 : vector<1x256xf32> to vector<4x256xf32>
    %25 = arith.mulf %5, %24 : vector<4x256xf32>
    %c0_18 = arith.constant 0 : index
    %c0_19 = arith.constant 0 : index
    %c0_20 = arith.constant 0 : index
    %26 = vector.load %arg9[%c0_18, %c0_19, %c0_20] : memref<1x4x256xf32, #tpu.memory_space<vmem>>, vector<1x4x256xf32>
    %27 = vector.shape_cast %26 : vector<1x4x256xf32> to vector<4x256xf32>
    %28 = vector.shape_cast %25 : vector<4x256xf32> to vector<1x4x256xf32>
    tpu.vector_store %arg9[%c0_18, %c0_19, %c0_20], %28 {strides = array<i32>} : memref<1x4x256xf32, #tpu.memory_space<vmem>>, vector<1x4x256xf32>,
    return
  }
  func.func @transform_0(%arg0: i32, %arg1: i32) -> (i32, i32, i32) {
    %c0_i32 = arith.constant 0 : i32
    %c0_i32_0 = arith.constant 0 : i32
    return %arg0, %c0_i32, %arg1 : i32, i32, i32
  }
  func.func @transform_1(%arg0: i32, %arg1: i32) -> (i32, i32, i32) {
    %c0_i32 = arith.constant 0 : i32
    %c0_i32_0 = arith.constant 0 : i32
    return %arg0, %c0_i32, %arg1 : i32, i32, i32
  }
  func.func @transform_2(%arg0: i32, %arg1: i32) -> (i32, i32) {
    %c0_i32 = arith.constant 0 : i32
    %c0_i32_0 = arith.constant 0 : i32
    %c0_i32_1 = arith.constant 0 : i32
    return %c0_i32, %c0_i32_0 : i32, i32
  }
  func.func @transform_3(%arg0: i32, %arg1: i32) -> (i32, i32) {
    %c0_i32 = arith.constant 0 : i32
    %c0_i32_0 = arith.constant 0 : i32
    %c0_i32_1 = arith.constant 0 : i32
    return %c0_i32, %c0_i32_0 : i32, i32
  }
  func.func @transform_4(%arg0: i32, %arg1: i32) -> (i32, i32) {
    %c0_i32 = arith.constant 0 : i32
    %c0_i32_0 = arith.constant 0 : i32
    %c0_i32_1 = arith.constant 0 : i32
    return %c0_i32, %c0_i32_0 : i32, i32
  }
  func.func @transform_5(%arg0: i32, %arg1: i32) -> (i32, i32) {
    %c0_i32 = arith.constant 0 : i32
    %c0_i32_0 = arith.constant 0 : i32
    %c0_i32_1 = arith.constant 0 : i32
    return %c0_i32, %c0_i32_0 : i32, i32
  }
  func.func @transform_6(%arg0: i32, %arg1: i32) -> i32 {
    %c0_i32 = arith.constant 0 : i32
    %c0_i32_0 = arith.constant 0 : i32
    return %c0_i32 : i32
  }
  func.func @transform_7(%arg0: i32, %arg1: i32) -> (i32, i32, i32) {
    %c0_i32 = arith.constant 0 : i32
    %c0_i32_0 = arith.constant 0 : i32
    return %arg0, %c0_i32, %arg1 : i32, i32, i32
  }
}

module attributes {stable_mosaic.version = 11 : i64} {
  func.func @_gate_kernel_fused(%arg0: i32, %arg1: i32, %arg2: memref<1x4x256xf32, #tpu.memory_space<vmem>>, %arg3: memref<1x4x256xf32, #tpu.memory_space<vmem>>, %arg4: memref<8x4xf32, #tpu.memory_space<vmem>>, %arg5: memref<8x4xf32, #tpu.memory_space<vmem>>, %arg6: memref<8x1xf32, #tpu.memory_space<vmem>>, %arg7: memref<1x8xf32, #tpu.memory_space<vmem>>, %arg8: memref<1xf32, #tpu.memory_space<smem>>, %arg9: memref<1x4x256xf32, #tpu.memory_space<vmem>>) attributes {dimension_semantics = [#tpu.dimension_semantics<parallel>, #tpu.dimension_semantics<parallel>], iteration_bounds = array<i64: 2, 1>, scalar_prefetch = 0 : i64, scratch_operands = 0 : i64, tpu.core_type = #tpu.core_type<tc>, window_params = [{transform_indices = @transform_0, window_bounds = array<i64: 1, 4, 256>}, {transform_indices = @transform_1, window_bounds = array<i64: 1, 4, 256>}, {pipeline_mode = #tpu.pipeline_mode<synchronous>, transform_indices = @transform_2, window_bounds = array<i64: 8, 4>}, {pipeline_mode = #tpu.pipeline_mode<synchronous>, transform_indices = @transform_3, window_bounds = array<i64: 8, 4>}, {pipeline_mode = #tpu.pipeline_mode<synchronous>, transform_indices = @transform_4, window_bounds = array<i64: 8, 1>}, {pipeline_mode = #tpu.pipeline_mode<synchronous>, transform_indices = @transform_5, window_bounds = array<i64: 1, 8>}, {transform_indices = @transform_6, window_bounds = array<i64: 1>}, {transform_indices = @transform_7, window_bounds = array<i64: 1, 4, 256>}]} {
    %c0 = arith.constant 0 : index
    %c0_0 = arith.constant 0 : index
    %0 = vector.load %arg4[%c0, %c0_0] : memref<8x4xf32, #tpu.memory_space<vmem>>, vector<8x4xf32>
    %c0_1 = arith.constant 0 : index
    %c0_2 = arith.constant 0 : index
    %c0_3 = arith.constant 0 : index
    %1 = vector.load %arg2[%c0_1, %c0_2, %c0_3] : memref<1x4x256xf32, #tpu.memory_space<vmem>>, vector<1x4x256xf32>
    %2 = vector.shape_cast %1 : vector<1x4x256xf32> to vector<4x256xf32>
    %cst = arith.constant dense<0.000000e+00> : vector<8x256xf32>
    %3 = tpu.matmul %0, %2, %cst {dimension_numbers = #tpu.dot_dimension_numbers<[1], [0], [0], [1], [0, 0, 1, 1], [], []>} : vector<8x4xf32>, vector<4x256xf32>, vector<8x256xf32> -> vector<8x256xf32>
    %c0_4 = arith.constant 0 : index
    %c0_5 = arith.constant 0 : index
    %c0_6 = arith.constant 0 : index
    %4 = vector.load %arg3[%c0_4, %c0_5, %c0_6] : memref<1x4x256xf32, #tpu.memory_space<vmem>>, vector<1x4x256xf32>
    %5 = vector.shape_cast %4 : vector<1x4x256xf32> to vector<4x256xf32>
    %c0_7 = arith.constant 0 : index
    %c0_8 = arith.constant 0 : index
    %6 = vector.load %arg5[%c0_7, %c0_8] : memref<8x4xf32, #tpu.memory_space<vmem>>, vector<8x4xf32>
    %cst_9 = arith.constant dense<0.000000e+00> : vector<8x256xf32>
    %7 = tpu.matmul %6, %5, %cst_9 {dimension_numbers = #tpu.dot_dimension_numbers<[1], [0], [0], [1], [0, 0, 1, 1], [], []>} : vector<8x4xf32>, vector<4x256xf32>, vector<8x256xf32> -> vector<8x256xf32>
    %8 = arith.addf %3, %7 : vector<8x256xf32>
    %c0_10 = arith.constant 0 : index
    %c0_11 = arith.constant 0 : index
    %9 = vector.load %arg6[%c0_10, %c0_11] : memref<8x1xf32, #tpu.memory_space<vmem>>, vector<8x1xf32>
    %10 = vector.broadcast %9 : vector<8x1xf32> to vector<8x256xf32>
    %11 = arith.addf %8, %10 : vector<8x256xf32>
    %cst_12 = arith.constant 0.000000e+00 : f32
    %12 = vector.broadcast %cst_12 : f32 to vector<8x256xf32>
    %13 = arith.maximumf %11, %12 : vector<8x256xf32>
    %c0_13 = arith.constant 0 : index
    %c0_14 = arith.constant 0 : index
    %14 = vector.load %arg7[%c0_13, %c0_14] : memref<1x8xf32, #tpu.memory_space<vmem>>, vector<1x8xf32>
    %cst_15 = arith.constant dense<0.000000e+00> : vector<1x256xf32>
    %15 = tpu.matmul %14, %13, %cst_15 {dimension_numbers = #tpu.dot_dimension_numbers<[1], [0], [0], [1], [0, 0, 1, 1], [], []>} : vector<1x8xf32>, vector<8x256xf32>, vector<1x256xf32> -> vector<1x256xf32>
    %c0_16 = arith.constant 0 : index
    %16 = memref.load %arg8[%c0_16] : memref<1xf32, #tpu.memory_space<smem>>
    %17 = vector.broadcast %16 : f32 to vector<1x256xf32>
    %18 = arith.addf %15, %17 : vector<1x256xf32>
    %19 = arith.negf %18 : vector<1x256xf32>
    %20 = math.exp %19 : vector<1x256xf32>
    %cst_17 = arith.constant 1.000000e+00 : f32
    %21 = vector.broadcast %cst_17 : f32 to vector<1x256xf32>
    %22 = arith.addf %21, %20 : vector<1x256xf32>
    %23 = arith.divf %21, %22 : vector<1x256xf32>
    %24 = vector.broadcast %23 : vector<1x256xf32> to vector<4x256xf32>
    %25 = arith.mulf %5, %24 : vector<4x256xf32>
    %c0_18 = arith.constant 0 : index
    %c0_19 = arith.constant 0 : index
    %c0_20 = arith.constant 0 : index
    %26 = vector.load %arg9[%c0_18, %c0_19, %c0_20] : memref<1x4x256xf32, #tpu.memory_space<vmem>>, vector<1x4x256xf32>
    %27 = vector.shape_cast %26 : vector<1x4x256xf32> to vector<4x256xf32>
    %28 = vector.shape_cast %25 : vector<4x256xf32> to vector<1x4x256xf32>
    tpu.vector_store %arg9[%c0_18, %c0_19, %c0_20], %28 {strides = array<i32>} : memref<1x4x256xf32, #tpu.memory_space<vmem>>, vector<1x4x256xf32>,
    return
  }
  func.func @transform_0(%arg0: i32, %arg1: i32) -> (i32, i32, i32) {
    %c0_i32 = arith.constant 0 : i32
    %c0_i32_0 = arith.constant 0 : i32
    return %arg0, %c0_i32, %arg1 : i32, i32, i32
  }
  func.func @transform_1(%arg0: i32, %arg1: i32) -> (i32, i32, i32) {
    %c0_i32 = arith.constant 0 : i32
    %c0_i32_0 = arith.constant 0 : i32
    return %arg0, %c0_i32, %arg1 : i32, i32, i32
  }
  func.func @transform_2(%arg0: i32, %arg1: i32) -> (i32, i32) {
    %c0_i32 = arith.constant 0 : i32
    %c0_i32_0 = arith.constant 0 : i32
    %c0_i32_1 = arith.constant 0 : i32
    return %c0_i32, %c0_i32_0 : i32, i32
  }
  func.func @transform_3(%arg0: i32, %arg1: i32) -> (i32, i32) {
    %c0_i32 = arith.constant 0 : i32
    %c0_i32_0 = arith.constant 0 : i32
    %c0_i32_1 = arith.constant 0 : i32
    return %c0_i32, %c0_i32_0 : i32, i32
  }
  func.func @transform_4(%arg0: i32, %arg1: i32) -> (i32, i32) {
    %c0_i32 = arith.constant 0 : i32
    %c0_i32_0 = arith.constant 0 : i32
    %c0_i32_1 = arith.constant 0 : i32
    return %c0_i32, %c0_i32_0 : i32, i32
  }
  func.func @transform_5(%arg0: i32, %arg1: i32) -> (i32, i32) {
    %c0_i32 = arith.constant 0 : i32
    %c0_i32_0 = arith.constant 0 : i32
    %c0_i32_1 = arith.constant 0 : i32
    return %c0_i32, %c0_i32_0 : i32, i32
  }
  func.func @transform_6(%arg0: i32, %arg1: i32) -> i32 {
    %c0_i32 = arith.constant 0 : i32
    %c0_i32_0 = arith.constant 0 : i32
    return %c0_i32 : i32
  }
  func.func @transform_7(%arg0: i32, %arg1: i32) -> (i32, i32, i32) {
    %c0_i32 = arith.constant 0 : i32
    %c0_i32_0 = arith.constant 0 : i32
    return %arg0, %c0_i32, %arg1 : i32, i32, i32
  }
}

</mosaic_0001>

<bundles_post_ra>
// kernel: tpu_custom_call.1
= control target key start
LH: loop header
LB: loop body
LE: loop exit
PB: predicated region body
PF: predicated region fallthrough
CT: control target
= control target key end

     0   :  { %s1069_s0 = inlined_call_operand.vmem [shape: f32[2,4,256], index: 0, kind: input, shape index: {}]   ;;  %s1070_s1 = inlined_call_operand.vmem [shape: f32[2,4,256], index: 1, kind: input, shape index: {}]   ;;  %s1071_s2 = inlined_call_operand.vmem [shape: f32[8,4], index: 2, kind: input, shape index: {}]   ;;  %s1072_s3 = inlined_call_operand.vmem [shape: f32[8,4], index: 3, kind: input, shape index: {}]   ;;  %s1073_s4 = inlined_call_operand.vmem [shape: f32[8,1], index: 4, kind: input, shape index: {}]   ;;  %s1074_s5 = inlined_call_operand.vmem [shape: f32[1,8], index: 5, kind: input, shape index: {}]   ;;  %s1075_s6 = inlined_call_operand.<no memory space> [shape: f32[1], index: 6, kind: input, shape index: {}]   ;;  %s1076_s7 = inlined_call_operand.hbm [shape: f32[2,4,256], index: 7, kind: output, shape index: {}]  }
   0x1   :  { %12 = sst [smem:[#allocation2]] %s1075_s6 }
   0x2   :  { %13 = vsyncpa [#allocation4], 0 }
   0x3   :  { %15 = vsyncpa [#allocation4 + $0x1], 0  ;;  %s955_s26 = smov 0   ;;  %s957_s27 = smov 0  }
   0x4   :  { %s959_s28 = smov 0   ;;  %s961_s29 = smov 0  }
   0x5   :  { %s963_s30 = smov 0   ;;  %s965_s8 = smov 0  }
   0x6 LB: > { %s736_s6 = sadd.s32 4294967295, %s907_s8   ;;  %s737_s9 = sadd.s32 4294967294, %s907_s8   ;;  %s907_s8 = sphi %s965_s8, %s21_s8   ;;  %s903_s30 = sphi %s963_s30, %s1083_s30   ;;  %s899_s29 = sphi %s961_s29, %s1082_s29   ;;  %s895_s28 = sphi %s959_s28, %s1081_s28   ;;  %s891_s27 = sphi %s957_s27, %s1080_s27   ;;  %s887_s26 = sphi %s955_s26, %s1079_s26  }
   0x7   : > { %s33_s10 = sadd.s32 1, %s903_s30  ;;  %s203_s11 = sadd.s32 1, %s895_s28 }
   0x8   : > { %p35_p0 = scmp.ge.s32.totalorder %s33_s10, 2  ;;  %p213_p1 = scmp.ne.s32.totalorder %s895_s28, %s891_s27 }
   0x9   : > { %p214_p2 = scmp.eq.s32.totalorder %s736_s6, 1  ;;  %p219_p3 = scmp.ne.s32.totalorder %s891_s27, %s887_s26 }
   0xa   : > { %s1085_s10 = smov (%p35_p0, %s33_s10), 0  ;;  %p220_p5 = scmp.eq.s32.totalorder %s737_s9, 1 }
   0xb   : > { %p995_p4 = por %p214_p2, %p213_p1  ;;  %s198_s13 = ssub.s32 %s903_s30, %s1085_s10 }
   0xc   : > { %p740_p6 = scmp.ge.s32.totalorder %s907_s8, 1  ;;  %p201_p7 = scmp.eq.s32.totalorder %s198_s13, 0 }
   0xd   : > { %p1002_p8 = por %p220_p5, %p219_p3  ;;  %p279_p9 = scmp.lt.s32.totalorder %s907_s8, 3 }
   0xe   : > { %s1008_s15 = scalar_select %p201_p7, %s895_s28, %s203_s11  }
   0xf   : > { %p280_p10 = pnand %p740_p6, %p279_p9 }
  0x10   : > { %p325_p11 = scmp.lt.s32.totalorder (!%p280_p10), %s899_s29, 1  ;;  %s762_s21 = sshll.u32 (!%p280_p10), %s899_s29, 7 }
  0x11   : > { %283 = sbr.rel (%p280_p10) target bundleno = 483 (0x1e3), region = 48  ;;  %s640_s6 = scalar_lea.hbm (!%p280_p10), %s1076_s7, %s762_s21 }
  0x12   : > { %s911_s13 = smov (!%p280_p10), [#allocation3]  }
  0x13   : > { %s835_s16 = sshll.u32 (!%p280_p10), %s911_s13, 4  ;;  %s836_s16 = int_to_ptr.vmem [resolvable:$false] %s835_s16 }
  0x16   : > { %v909_v0 = vmov 0.0   ;;  %v511_v1 = vld [vmem:[%s1073_s4] sm:$0xff]  ;;  %s326_s18 = scalar_select %p325_p11, %s899_s29, 1  ;;  %v910_v2 = vmov 0   ;;  %vm355_vm0 = vcmask 1043456   ;;  %vm351_vm1 = vcmask 31744  }
  0x17   : > { %424 = vmatprep.mubr.f32.mxu0 %v909_v0  ;;  %504 = vmatprep.mubr.f32.mxu1 %v909_v0  ;;  %v348_v7 = vld [vmem:[%s1072_s3] sm:$0xff]  ;;  %vm524_vm2 = vcmask 64512   ;;  %v611_v32 = vlaneseq  ;;  %s837_s29 = scalar_lea.vmem %s836_s16, 256 }
  0x18   : > { %820 = vset.pattern.permute.xlu0 %v910_v2  ;;  %s760_s19 = sshll.u32 %s326_s18, 3  ;;  %v345_v8 = vld [vmem:[%s1071_s2] sm:$0xff]  ;;  %s522_s18 = sld [smem:[#allocation2]] }
  0x19   : > { %514 = vperm.xlu0 %820, %v511_v1   ;;  %s342_s22 = scalar_lea.vmem %s1070_s1, %s760_s19  ;;  %s332_s25 = scalar_lea.vmem %s1069_s0, %s760_s19  ;;  %v521_v20 = vld [vmem:[%s1074_s5] sm:$0x1]  ;;  %v612_v33 = vshrl.u32 %v611_v32, 7 }
  0x1a   : > { %v347_v3 = vld [vmem:[%s342_s22] sm:$0xff]  ;;  %s321_s19 = sand.u32 1, %s891_s27  }
  0x1b   : > { %v346_v4 = vld [vmem:[%s332_s25] sm:$0xff]  ;;  %v350_v5 = vcombine.high %v347_v3, %v347_v3  ;;  %s741_s20 = sshll.u32 %s321_s19, 3  ;;  %v613_v34 = vsub.s32 0, %v612_v33  ;;  %s626_s9 = scalar_lea.sflag [#allocation4], %s321_s19 }
  0x1c   : > { %v432_v6 = vcombine.high %v346_v4, %v346_v4  ;;  %s323_s22 = scalar_lea.vmem [#allocation3], %s741_s20 }
  0x1d   : > { %746 = vmatprep.subr.msk.mxu0 %vm355_vm0, %v350_v5  ;;  %s642_s23 = sshll.u32 %s323_s22, 4  ;;  %s643_s23 = int_to_ptr.vmem [resolvable:$true] %s642_s23 }
  0x1e   : > { %749 = vmatprep.subr.msk.mxu1 %vm355_vm0, %v432_v6  ;;  %747 = vmatpush1.msk.msra.mxu0 %vm355_vm0, %v347_v3  ;;  %v523_v21 = vstv %s522_s18  ;;  %s831_s11 = scalar_lea.vmem %s643_s23, 128  ;;  %p838_p1 = scmp.lt.s32.totalorder %s643_s23, %s836_s16 }
  0x1f   : > { %750 = vmatpush1.msk.msra.mxu1 %vm355_vm0, %v346_v4  ;;  %748 = vmatmul.mubr.msk.f32.vlgmr.msra.gmra.mxu0 %vm351_vm1, %v348_v7  ;;  %p832_p12 = scmp.ne.s32.totalorder %s643_s23, %s831_s11  ;;  %p839_p2 = scmp.lt.s32.totalorder %s837_s29, %s831_s11 }
  0x20   : > { %751 = vmatmul.mubr.msk.f32.vlgmr.msra.gmra.mxu1 %vm351_vm1, %v345_v8  ;;  %592 = vmatprep.mubr.f32.mxu0 %v909_v0 }
  0x21   : > { %p833_p13 = pnand %p832_p12, %p995_p4  ;;  %p840_p3 = por %p839_p2, %p838_p1 }
  0x23   : > { %p834_p0 = pneg %p833_p13 }
  0x25   : > { %p841_p5 = pnand %p840_p3, %p834_p0 }
  0x94   : > { %v515_v12 = vpop.permute.xlu0 %514 }
  0xdf   : > { %v426_v9 = vpop.f32.mrf.mxu0 }
  0xe0   : > { %v506_v10 = vpop.f32.mrf.mxu1 }
  0xe1   : > { %v507_v11 = vadd.f32 %v506_v10, %v426_v9  ;;  %v428_v13 = vpop.f32.mrf.mxu0 }
  0xe2   : > { %v508_v14 = vpop.f32.mrf.mxu1 }
  0xe3   : > { %v509_v15 = vadd.f32 %v508_v14, %v428_v13  ;;  %v517_v16 = vadd.f32 %v515_v12, %v507_v11 }
  0xe5   : > { %v518_v17 = vadd.f32 %v515_v12, %v509_v15  ;;  %v519_v19 = vmax.f32 %v517_v16, 0.0 }
  0xe7   : > { %v520_v18 = vmax.f32 %v518_v17, 0.0 }
  0xe9   : > { %558 = vmatprep.subr.mxu0 %v520_v18 }
  0xea   : > { %559 = vmatpush1.msra.mxu0 %v519_v19 }
  0xeb   : > { %752 = vmatmul.mubr.msk.f32.vlgmr.msra.gmra.mxu0 %vm524_vm2, %v521_v20 }
 0x1ab   : > { %v594_v22 = vpop.f32.mrf.mxu0 }
 0x1ac   : > { %v595_v23 = vadd.f32 %v594_v22, %v523_v21 }
 0x1ad   : > { %v596_v24 = vpop.f32.mrf.mxu0 }
 0x1ae   : > { %v753_v25 = vmul.f32 -1.442695, %v595_v23  ;;  %v597_v26 = vadd.f32 %v596_v24, %v523_v21 }
 0x1b0   : > { %823 = vpow2.f32 %v753_v25  ;;  %v754_v27 = vmul.f32 -1.442695, %v597_v26 }
 0x1b2   : > { %825 = vpow2.f32 %v754_v27 }
 0x1bd   : > { %v824_v28 = vpop.eup %823 }
 0x1be   : > { %v605_v29 = vadd.f32 1.0, %v824_v28 }
 0x1bf   : > { %v826_v30 = vpop.eup %825 }
 0x1c0   : > { %827 = vrcp.f32 %v605_v29  ;;  %v606_v31 = vadd.f32 1.0, %v826_v30 }
 0x1c2   : > { %829 = vrcp.f32 %v606_v31 }
 0x1cd   : > { %v828_v35 = vpop.eup %827 }
 0x1ce   : > { %v614_v37 = vrot.slane %v828_v35, %v613_v34 }
 0x1cf   : > { %v830_v36 = vpop.eup %829 }
 0x1d0   : > { %v618_v38 = vrot.slane %v830_v36, %v613_v34 }
 0x1d2   : > { %v621_v39 = vcombine.low %v614_v37, %v618_v38 }
 0x1d4   : > { %v623_v40 = vmul.f32 %v621_v39, %v347_v3 }
 0x1d6   : > { %624 = vst [vmem:[%s323_s22] sm:$0xff] %v623_v40 }
 0x1d7   : > { %844 = shalt.err (!%p841_p5)
}
 0x1d8   : > { %s845_s17 = scalar_lea.hbm %s640_s6, 128  ;;  %s849_s20 = scalar_lea.hbm %s1076_s7, 256 }
 0x1d9   : > { %p846_p6 = scmp.ne.s32.totalorder %s640_s6, %s845_s17  ;;  %p850_p10 = scmp.lt.s32.totalorder %s640_s6, %s1076_s7 }
 0x1da   : > { %p851_p11 = scmp.lt.s32.totalorder %s849_s20, %s845_s17 }
 0x1db   : > { %p847_p7 = pnand %p846_p6, %p995_p4 }
 0x1dc   : > { %p852_p12 = por %p851_p11, %p850_p10 }
 0x1dd   : > { %p848_p9 = pneg %p847_p7 }
 0x1df   : > { %p853_p13 = pnand %p852_p12, %p848_p9 }
 0x1e1   : > { %856 = shalt.err (!%p853_p13)
}
 0x1e2   : > { %763 = dma.vmem_to_hbm [thread:$0]  (%p995_p4), %s643_s23, 128, %s640_s6, %s626_s9  }
 0x1e3 PF: > { %p769_p0 = scmp.ge.s32.totalorder %s907_s8, 2  ;;  %s654_s24 = sand.u32 1, %s887_s26  }
 0x1e4   : > { %s655_s25 = scalar_lea.sflag [#allocation4], %s654_s24 }
 0x1e5   : > { %p766_p1 = pnand %p769_p0, %p1002_p8 }
 0x1e7   : > { %p767_p2 = pneg %p766_p1 }
 0x1e9   : > { %882 = dma.done.wait (%p767_p2), %s655_s25, 128  }
 0x1ea   : > { %884 = vsyncadd (%p767_p2), %s655_s25, 4294967168  ;;  %s21_s8 = sadd.s32 1, %s907_s8   ;;  %s1079_s26 = smov %s891_s27 }
 0x1eb   : > { %p18_p3 = scmp.ge.s32.totalorder %s21_s8, 4   ;;  %s1080_s27 = smov %s895_s28 }
 0x1ec   : > { %s1081_s28 = smov %s1008_s15  ;;  %s1082_s29 = smov %s903_s30 }
 0x1ed   : > { %s1083_s30 = smov %s1085_s10  ;;  %20 = sbr.rel (!%p18_p3) target bundleno = 6 (0x6), region = 86 }
 0x1f2   :  { %660 = vsyncpa [#allocation4], 1 }
 0x1f3   :  { %662 = vsyncpa [#allocation4 + $0x1], 1 }

// kernel: tpu_custom_call.1
= control target key start
LH: loop header
LB: loop body
LE: loop exit
PB: predicated region body
PF: predicated region fallthrough
CT: control target
= control target key end

     0   :  { %s1069_s0 = inlined_call_operand.vmem [shape: f32[2,4,256], index: 0, kind: input, shape index: {}]   ;;  %s1070_s1 = inlined_call_operand.vmem [shape: f32[2,4,256], index: 1, kind: input, shape index: {}]   ;;  %s1071_s2 = inlined_call_operand.vmem [shape: f32[8,4], index: 2, kind: input, shape index: {}]   ;;  %s1072_s3 = inlined_call_operand.vmem [shape: f32[8,4], index: 3, kind: input, shape index: {}]   ;;  %s1073_s4 = inlined_call_operand.vmem [shape: f32[8,1], index: 4, kind: input, shape index: {}]   ;;  %s1074_s5 = inlined_call_operand.vmem [shape: f32[1,8], index: 5, kind: input, shape index: {}]   ;;  %s1075_s6 = inlined_call_operand.<no memory space> [shape: f32[1], index: 6, kind: input, shape index: {}]   ;;  %s1076_s7 = inlined_call_operand.hbm [shape: f32[2,4,256], index: 7, kind: output, shape index: {}]  }
   0x1   :  { %12 = sst [smem:[#allocation2]] %s1075_s6 }
   0x2   :  { %13 = vsyncpa [#allocation4], 0 }
   0x3   :  { %15 = vsyncpa [#allocation4 + $0x1], 0  ;;  %s955_s26 = smov 0   ;;  %s957_s27 = smov 0  }
   0x4   :  { %s959_s28 = smov 0   ;;  %s961_s29 = smov 0  }
   0x5   :  { %s963_s30 = smov 0   ;;  %s965_s8 = smov 0  }
   0x6 LB: > { %s736_s6 = sadd.s32 4294967295, %s907_s8   ;;  %s737_s9 = sadd.s32 4294967294, %s907_s8   ;;  %s907_s8 = sphi %s965_s8, %s21_s8   ;;  %s903_s30 = sphi %s963_s30, %s1083_s30   ;;  %s899_s29 = sphi %s961_s29, %s1082_s29   ;;  %s895_s28 = sphi %s959_s28, %s1081_s28   ;;  %s891_s27 = sphi %s957_s27, %s1080_s27   ;;  %s887_s26 = sphi %s955_s26, %s1079_s26  }
   0x7   : > { %s33_s10 = sadd.s32 1, %s903_s30  ;;  %s203_s11 = sadd.s32 1, %s895_s28 }
   0x8   : > { %p35_p0 = scmp.ge.s32.totalorder %s33_s10, 2  ;;  %p213_p1 = scmp.ne.s32.totalorder %s895_s28, %s891_s27 }
   0x9   : > { %p214_p2 = scmp.eq.s32.totalorder %s736_s6, 1  ;;  %p219_p3 = scmp.ne.s32.totalorder %s891_s27, %s887_s26 }
   0xa   : > { %s1085_s10 = smov (%p35_p0, %s33_s10), 0  ;;  %p220_p5 = scmp.eq.s32.totalorder %s737_s9, 1 }
   0xb   : > { %p995_p4 = por %p214_p2, %p213_p1  ;;  %s198_s13 = ssub.s32 %s903_s30, %s1085_s10 }
   0xc   : > { %p740_p6 = scmp.ge.s32.totalorder %s907_s8, 1  ;;  %p201_p7 = scmp.eq.s32.totalorder %s198_s13, 0 }
   0xd   : > { %p1002_p8 = por %p220_p5, %p219_p3  ;;  %p279_p9 = scmp.lt.s32.totalorder %s907_s8, 3 }
   0xe   : > { %s1008_s15 = scalar_select %p201_p7, %s895_s28, %s203_s11  }
   0xf   : > { %p280_p10 = pnand %p740_p6, %p279_p9 }
  0x10   : > { %p325_p11 = scmp.lt.s32.totalorder (!%p280_p10), %s899_s29, 1  ;;  %s762_s21 = sshll.u32 (!%p280_p10), %s899_s29, 7 }
  0x11   : > { %283 = sbr.rel (%p280_p10) target bundleno = 483 (0x1e3), region = 48  ;;  %s640_s6 = scalar_lea.hbm (!%p280_p10), %s1076_s7, %s762_s21 }
  0x12   : > { %s911_s13 = smov (!%p280_p10), [#allocation3]  }
  0x13   : > { %s835_s16 = sshll.u32 (!%p280_p10), %s911_s13, 4  ;;  %s836_s16 = int_to_ptr.vmem [resolvable:$false] %s835_s16 }
  0x16   : > { %v909_v0 = vmov 0.0   ;;  %v511_v1 = vld [vmem:[%s1073_s4] sm:$0xff]  ;;  %s326_s18 = scalar_select %p325_p11, %s899_s29, 1  ;;  %v910_v2 = vmov 0   ;;  %vm355_vm0 = vcmask 1043456   ;;  %vm351_vm1 = vcmask 31744  }
  0x17   : > { %424 = vmatprep.mubr.f32.mxu0 %v909_v0  ;;  %504 = vmatprep.mubr.f32.mxu1 %v909_v0  ;;  %v348_v7 = vld [vmem:[%s1072_s3] sm:$0xff]  ;;  %vm524_vm2 = vcmask 64512   ;;  %v611_v32 = vlaneseq  ;;  %s837_s29 = scalar_lea.vmem %s836_s16, 256 }
  0x18   : > { %820 = vset.pattern.permute.xlu0 %v910_v2  ;;  %s760_s19 = sshll.u32 %s326_s18, 3  ;;  %v345_v8 = vld [vmem:[%s1071_s2] sm:$0xff]  ;;  %s522_s18 = sld [smem:[#allocation2]] }
  0x19   : > { %514 = vperm.xlu0 %820, %v511_v1   ;;  %s342_s22 = scalar_lea.vmem %s1070_s1, %s760_s19  ;;  %s332_s25 = scalar_lea.vmem %s1069_s0, %s760_s19  ;;  %v521_v20 = vld [vmem:[%s1074_s5] sm:$0x1]  ;;  %v612_v33 = vshrl.u32 %v611_v32, 7 }
  0x1a   : > { %v347_v3 = vld [vmem:[%s342_s22] sm:$0xff]  ;;  %s321_s19 = sand.u32 1, %s891_s27  }
  0x1b   : > { %v346_v4 = vld [vmem:[%s332_s25] sm:$0xff]  ;;  %v350_v5 = vcombine.high %v347_v3, %v347_v3  ;;  %s741_s20 = sshll.u32 %s321_s19, 3  ;;  %v613_v34 = vsub.s32 0, %v612_v33  ;;  %s626_s9 = scalar_lea.sflag [#allocation4], %s321_s19 }
  0x1c   : > { %v432_v6 = vcombine.high %v346_v4, %v346_v4  ;;  %s323_s22 = scalar_lea.vmem [#allocation3], %s741_s20 }
  0x1d   : > { %746 = vmatprep.subr.msk.mxu0 %vm355_vm0, %v350_v5  ;;  %s642_s23 = sshll.u32 %s323_s22, 4  ;;  %s643_s23 = int_to_ptr.vmem [resolvable:$true] %s642_s23 }
  0x1e   : > { %749 = vmatprep.subr.msk.mxu1 %vm355_vm0, %v432_v6  ;;  %747 = vmatpush1.msk.msra.mxu0 %vm355_vm0, %v347_v3  ;;  %v523_v21 = vstv %s522_s18  ;;  %s831_s11 = scalar_lea.vmem %s643_s23, 128  ;;  %p838_p1 = scmp.lt.s32.totalorder %s643_s23, %s836_s16 }
  0x1f   : > { %750 = vmatpush1.msk.msra.mxu1 %vm355_vm0, %v346_v4  ;;  %748 = vmatmul.mubr.msk.f32.vlgmr.msra.gmra.mxu0 %vm351_vm1, %v348_v7  ;;  %p832_p12 = scmp.ne.s32.totalorder %s643_s23, %s831_s11  ;;  %p839_p2 = scmp.lt.s32.totalorder %s837_s29, %s831_s11 }
  0x20   : > { %751 = vmatmul.mubr.msk.f32.vlgmr.msra.gmra.mxu1 %vm351_vm1, %v345_v8  ;;  %592 = vmatprep.mubr.f32.mxu0 %v909_v0 }
  0x21   : > { %p833_p13 = pnand %p832_p12, %p995_p4  ;;  %p840_p3 = por %p839_p2, %p838_p1 }
  0x23   : > { %p834_p0 = pneg %p833_p13 }
  0x25   : > { %p841_p5 = pnand %p840_p3, %p834_p0 }
  0x94   : > { %v515_v12 = vpop.permute.xlu0 %514 }
  0xdf   : > { %v426_v9 = vpop.f32.mrf.mxu0 }
  0xe0   : > { %v506_v10 = vpop.f32.mrf.mxu1 }
  0xe1   : > { %v507_v11 = vadd.f32 %v506_v10, %v426_v9  ;;  %v428_v13 = vpop.f32.mrf.mxu0 }
  0xe2   : > { %v508_v14 = vpop.f32.mrf.mxu1 }
  0xe3   : > { %v509_v15 = vadd.f32 %v508_v14, %v428_v13  ;;  %v517_v16 = vadd.f32 %v515_v12, %v507_v11 }
  0xe5   : > { %v518_v17 = vadd.f32 %v515_v12, %v509_v15  ;;  %v519_v19 = vmax.f32 %v517_v16, 0.0 }
  0xe7   : > { %v520_v18 = vmax.f32 %v518_v17, 0.0 }
  0xe9   : > { %558 = vmatprep.subr.mxu0 %v520_v18 }
  0xea   : > { %559 = vmatpush1.msra.mxu0 %v519_v19 }
  0xeb   : > { %752 = vmatmul.mubr.msk.f32.vlgmr.msra.gmra.mxu0 %vm524_vm2, %v521_v20 }
 0x1ab   : > { %v594_v22 = vpop.f32.mrf.mxu0 }
 0x1ac   : > { %v595_v23 = vadd.f32 %v594_v22, %v523_v21 }
 0x1ad   : > { %v596_v24 = vpop.f32.mrf.mxu0 }
 0x1ae   : > { %v753_v25 = vmul.f32 -1.442695, %v595_v23  ;;  %v597_v26 = vadd.f32 %v596_v24, %v523_v21 }
 0x1b0   : > { %823 = vpow2.f32 %v753_v25  ;;  %v754_v27 = vmul.f32 -1.442695, %v597_v26 }
 0x1b2   : > { %825 = vpow2.f32 %v754_v27 }
 0x1bd   : > { %v824_v28 = vpop.eup %823 }
 0x1be   : > { %v605_v29 = vadd.f32 1.0, %v824_v28 }
 0x1bf   : > { %v826_v30 = vpop.eup %825 }
 0x1c0   : > { %827 = vrcp.f32 %v605_v29  ;;  %v606_v31 = vadd.f32 1.0, %v826_v30 }
 0x1c2   : > { %829 = vrcp.f32 %v606_v31 }
 0x1cd   : > { %v828_v35 = vpop.eup %827 }
 0x1ce   : > { %v614_v37 = vrot.slane %v828_v35, %v613_v34 }
 0x1cf   : > { %v830_v36 = vpop.eup %829 }
 0x1d0   : > { %v618_v38 = vrot.slane %v830_v36, %v613_v34 }
 0x1d2   : > { %v621_v39 = vcombine.low %v614_v37, %v618_v38 }
 0x1d4   : > { %v623_v40 = vmul.f32 %v621_v39, %v347_v3 }
 0x1d6   : > { %624 = vst [vmem:[%s323_s22] sm:$0xff] %v623_v40 }
 0x1d7   : > { %844 = shalt.err (!%p841_p5)
}
 0x1d8   : > { %s845_s17 = scalar_lea.hbm %s640_s6, 128  ;;  %s849_s20 = scalar_lea.hbm %s1076_s7, 256 }
 0x1d9   : > { %p846_p6 = scmp.ne.s32.totalorder %s640_s6, %s845_s17  ;;  %p850_p10 = scmp.lt.s32.totalorder %s640_s6, %s1076_s7 }
 0x1da   : > { %p851_p11 = scmp.lt.s32.totalorder %s849_s20, %s845_s17 }
 0x1db   : > { %p847_p7 = pnand %p846_p6, %p995_p4 }
 0x1dc   : > { %p852_p12 = por %p851_p11, %p850_p10 }
 0x1dd   : > { %p848_p9 = pneg %p847_p7 }
 0x1df   : > { %p853_p13 = pnand %p852_p12, %p848_p9 }
 0x1e1   : > { %856 = shalt.err (!%p853_p13)
}
 0x1e2   : > { %763 = dma.vmem_to_hbm [thread:$0]  (%p995_p4), %s643_s23, 128, %s640_s6, %s626_s9  }
 0x1e3 PF: > { %p769_p0 = scmp.ge.s32.totalorder %s907_s8, 2  ;;  %s654_s24 = sand.u32 1, %s887_s26  }
 0x1e4   : > { %s655_s25 = scalar_lea.sflag [#allocation4], %s654_s24 }
 0x1e5   : > { %p766_p1 = pnand %p769_p0, %p1002_p8 }
 0x1e7   : > { %p767_p2 = pneg %p766_p1 }
 0x1e9   : > { %882 = dma.done.wait (%p767_p2), %s655_s25, 128  }
 0x1ea   : > { %884 = vsyncadd (%p767_p2), %s655_s25, 4294967168  ;;  %s21_s8 = sadd.s32 1, %s907_s8   ;;  %s1079_s26 = smov %s891_s27 }
 0x1eb   : > { %p18_p3 = scmp.ge.s32.totalorder %s21_s8, 4   ;;  %s1080_s27 = smov %s895_s28 }
 0x1ec   : > { %s1081_s28 = smov %s1008_s15  ;;  %s1082_s29 = smov %s903_s30 }
 0x1ed   : > { %s1083_s30 = smov %s1085_s10  ;;  %20 = sbr.rel (!%p18_p3) target bundleno = 6 (0x6), region = 86 }
 0x1f2   :  { %660 = vsyncpa [#allocation4], 1 }
 0x1f3   :  { %662 = vsyncpa [#allocation4 + $0x1], 1 }

</bundles_post_ra>
